<compile_context>
chip_gen: v7x
topology: tpu7x:2x2x1
jax: 0.10.0
libtpu: 0.0.40
codegen_flags: <defaults>
</compile_context>

<pallas_src>
import math

import jax
import jax.numpy as jnp
from jax.experimental import pallas as pl
from jax.experimental.pallas import tpu as pltpu

_HALF_LOG_2PI = 0.5 * math.log(2.0 * math.pi)
_LANES = 128
_SUBLANES = 8
_MAX_CHUNK_ROWS = 1024  # 1024 x 128 f32 = 512 KiB per input per buffer


def _elbo_mse_partial_kernel(loc_ref, scale_ref, tgt_ref, lp_ref, sse_ref):
    """One grid step: reduce a (chunk_rows, 128) tile to (8, 128) partial sums.

    lp partials exclude the -0.5*log(2*pi) constant (folded in at finalize).
    Padded elements (loc=target=0, scale=1) contribute exactly 0 to both sums.
    """
    loc = loc_ref[...].astype(jnp.float32)
    scale = scale_ref[...].astype(jnp.float32)
    tgt = tgt_ref[...].astype(jnp.float32)

    diff = tgt - loc
    d2 = diff * diff                                   # reused: mse and z^2
    lp = -0.5 * (d2 / (scale * scale)) - jnp.log(scale)

    rows = loc.shape[0]                                # static (chunk_rows)
    lp_ref[...] = jnp.sum(lp.reshape(rows // _SUBLANES, _SUBLANES, _LANES), axis=0)
    sse_ref[...] = jnp.sum(d2.reshape(rows // _SUBLANES, _SUBLANES, _LANES), axis=0)


def elbo_loss_mse(loc, scale, target):
    """Returns (loss, log_likelihood, kld=None, mse), matching the torch module."""
    assert loc.shape == scale.shape == target.shape
    B, N, D = loc.shape
    total = B * N * D

    # Choose a lane-dense chunking of the flattened element stream.
    rows_needed = -(-total // _LANES)
    if rows_needed <= _MAX_CHUNK_ROWS:
        chunk_rows = max(_SUBLANES, -(-rows_needed // _SUBLANES) * _SUBLANES)
        num_blocks = 1
    else:
        chunk_rows = _MAX_CHUNK_ROWS
        num_blocks = -(-rows_needed // chunk_rows)
    padded_rows = num_blocks * chunk_rows
    pad = padded_rows * _LANES - total

    def _prep(x, pad_value):
        x = x.reshape(-1)
        if pad:
            x = jnp.pad(x, (0, pad), constant_values=pad_value)
        return x.reshape(padded_rows, _LANES)

    loc_p = _prep(loc, 0)
    scale_p = _prep(scale, 1)   # neutral: log(1)=0, z^2=0
    tgt_p = _prep(target, 0)

    in_kwargs = {}
    if num_blocks >= 3:
        # Deeper input buffering hides DMA start latency for the 3 input streams.
        in_kwargs["pipeline_mode"] = pl.Buffered(3)

    def make_in_spec():
        return pl.BlockSpec((chunk_rows, _LANES), lambda i: (i, 0), **in_kwargs)

    out_spec = pl.BlockSpec((_SUBLANES, _LANES), lambda i: (i, 0))
    partial_shape = jax.ShapeDtypeStruct((num_blocks * _SUBLANES, _LANES), jnp.float32)

    lp_part, sse_part = pl.pallas_call(
        _elbo_mse_partial_kernel,
        out_shape=(partial_shape, partial_shape),
        grid_spec=pltpu.PrefetchScalarGridSpec(
            num_scalar_prefetch=0,
            grid=(num_blocks,),
            in_specs=[make_in_spec(), make_in_spec(), make_in_spec()],
            out_specs=(out_spec, out_spec),
        ),
        compiler_params=pltpu.CompilerParams(
            dimension_semantics=("parallel",),
        ),
    )(loc_p, scale_p, tgt_p)

    # Finalize (tiny) in the wrapper: sum of partials, constant fold, normalize.
    ll = jnp.sum(lp_part) / jnp.float32(B) - jnp.float32(N * D) * _HALF_LOG_2PI
    loss = -ll
    mse = jnp.sum(sse_part) / jnp.float32(total)
    return loss, ll, None, mse


def _reference(loc, scale, target):
    z = (target - loc) / scale
    log_prob = -0.5 * z * z - jnp.log(scale) - _HALF_LOG_2PI
    ll = jnp.mean(jnp.sum(log_prob, axis=(-1, -2)))
    loss = -ll
    mse = jnp.mean((loc - target) ** 2)
    return loss, ll, mse


def _check(B, N, D, key, rtol, atol):
    k1, k2, k3 = jax.random.split(key, 3)
    loc = jax.random.normal(k1, (B, N, D), dtype=jnp.float32)
    scale = 0.5 + jax.nn.softplus(jax.random.normal(k2, (B, N, D), dtype=jnp.float32))
    target = jax.random.normal(k3, (B, N, D), dtype=jnp.float32)

    loss, ll, kld_out, mse = elbo_loss_mse(loc, scale, target)
    jax.block_until_ready((loss, ll, mse))

    ref_loss, ref_ll, ref_mse = _reference(loc, scale, target)
    assert kld_out is None
    assert jnp.allclose(loss, ref_loss, rtol=rtol, atol=atol), (loss, ref_loss)
    assert jnp.allclose(ll, ref_ll, rtol=rtol, atol=atol), (ll, ref_ll)
    assert jnp.allclose(mse, ref_mse, rtol=rtol, atol=atol), (mse, ref_mse)


if __name__ == "__main__":
    key = jax.random.PRNGKey(0)
    k_small, k_med = jax.random.split(key)

    # Small shape consistent with the module: [task, num_points, y_dim].
    _check(2, 16, 8, k_small, rtol=1e-5, atol=1e-5)

    # Medium shape: exercises multi-block grid, tail padding, and Buffered(3) path.
    _check(6, 700, 64, k_med, rtol=1e-4, atol=1e-3)

    print("KERNEL_OK")
</pallas_src>

<mosaic_0001>
module attributes {stable_mosaic.version = 11 : i64} {
  func.func @_elbo_mse_partial_kernel(%arg0: i32, %arg1: memref<8x128xf32, #tpu.memory_space<vmem>>, %arg2: memref<8x128xf32, #tpu.memory_space<vmem>>, %arg3: memref<8x128xf32, #tpu.memory_space<vmem>>, %arg4: memref<8x128xf32, #tpu.memory_space<vmem>>, %arg5: memref<8x128xf32, #tpu.memory_space<vmem>>) attributes {dimension_semantics = [#tpu.dimension_semantics<parallel>], iteration_bounds = array<i64: 1>, scalar_prefetch = 0 : i64, scratch_operands = 0 : i64, tpu.core_type = #tpu.core_type<tc>, window_params = [{transform_indices = @transform_0, window_bounds = array<i64: 8, 128>}, {transform_indices = @transform_1, window_bounds = array<i64: 8, 128>}, {transform_indices = @transform_2, window_bounds = array<i64: 8, 128>}, {transform_indices = @transform_3, window_bounds = array<i64: 8, 128>}, {transform_indices = @transform_4, window_bounds = array<i64: 8, 128>}]} {
    %c0 = arith.constant 0 : index
    %c0_0 = arith.constant 0 : index
    %0 = vector.load %arg1[%c0, %c0_0] : memref<8x128xf32, #tpu.memory_space<vmem>>, vector<8x128xf32>
    %c0_1 = arith.constant 0 : index
    %c0_2 = arith.constant 0 : index
    %1 = vector.load %arg2[%c0_1, %c0_2] : memref<8x128xf32, #tpu.memory_space<vmem>>, vector<8x128xf32>
    %c0_3 = arith.constant 0 : index
    %c0_4 = arith.constant 0 : index
    %2 = vector.load %arg3[%c0_3, %c0_4] : memref<8x128xf32, #tpu.memory_space<vmem>>, vector<8x128xf32>
    %3 = arith.subf %2, %0 : vector<8x128xf32>
    %4 = arith.mulf %3, %3 : vector<8x128xf32>
    %5 = arith.mulf %1, %1 : vector<8x128xf32>
    %6 = arith.divf %4, %5 : vector<8x128xf32>
    %cst = arith.constant -5.000000e-01 : f32
    %7 = vector.broadcast %cst : f32 to vector<8x128xf32>
    %8 = arith.mulf %7, %6 : vector<8x128xf32>
    %9 = math.log %1 : vector<8x128xf32>
    %10 = arith.subf %8, %9 : vector<8x128xf32>
    %11 = vector.shape_cast %10 : vector<8x128xf32> to vector<1x8x128xf32>
    %cst_5 = arith.constant dense<0.000000e+00> : vector<8x128xf32>
    %12 = vector.multi_reduction <add>, %11, %cst_5 [0] : vector<1x8x128xf32> to vector<8x128xf32>
    %c0_6 = arith.constant 0 : index
    %c0_7 = arith.constant 0 : index
    %13 = vector.load %arg4[%c0_6, %c0_7] : memref<8x128xf32, #tpu.memory_space<vmem>>, vector<8x128xf32>
    tpu.vector_store %arg4[%c0_6, %c0_7], %12 {strides = array<i32>} : memref<8x128xf32, #tpu.memory_space<vmem>>, vector<8x128xf32>,
    %14 = vector.shape_cast %4 : vector<8x128xf32> to vector<1x8x128xf32>
    %cst_8 = arith.constant dense<0.000000e+00> : vector<8x128xf32>
    %15 = vector.multi_reduction <add>, %14, %cst_8 [0] : vector<1x8x128xf32> to vector<8x128xf32>
    %c0_9 = arith.constant 0 : index
    %c0_10 = arith.constant 0 : index
    %16 = vector.load %arg5[%c0_9, %c0_10] : memref<8x128xf32, #tpu.memory_space<vmem>>, vector<8x128xf32>
    tpu.vector_store %arg5[%c0_9, %c0_10], %15 {strides = array<i32>} : memref<8x128xf32, #tpu.memory_space<vmem>>, vector<8x128xf32>,
    return
  }
  func.func @transform_0(%arg0: i32) -> (i32, i32) {
    %c0_i32 = arith.constant 0 : i32
    %c0_i32_0 = arith.constant 0 : i32
    return %arg0, %c0_i32 : i32, i32
  }
  func.func @transform_1(%arg0: i32) -> (i32, i32) {
    %c0_i32 = arith.constant 0 : i32
    %c0_i32_0 = arith.constant 0 : i32
    return %arg0, %c0_i32 : i32, i32
  }
  func.func @transform_2(%arg0: i32) -> (i32, i32) {
    %c0_i32 = arith.constant 0 : i32
    %c0_i32_0 = arith.constant 0 : i32
    return %arg0, %c0_i32 : i32, i32
  }
  func.func @transform_3(%arg0: i32) -> (i32, i32) {
    %c0_i32 = arith.constant 0 : i32
    %c0_i32_0 = arith.constant 0 : i32
    return %arg0, %c0_i32 : i32, i32
  }
  func.func @transform_4(%arg0: i32) -> (i32, i32) {
    %c0_i32 = arith.constant 0 : i32
    %c0_i32_0 = arith.constant 0 : i32
    return %arg0, %c0_i32 : i32, i32
  }
}

</mosaic_0001>

<bundles_post_ra>
// kernel: tpu_custom_call.1
= control target key start
LH: loop header
LB: loop body
LE: loop exit
PB: predicated region body
PF: predicated region fallthrough
CT: control target
= control target key end

     0   :  { %10 = vsyncpa [#allocation3], 0  ;;  %s316_s0 = inlined_call_operand.hbm [shape: f32[8,128], index: 0, kind: input, shape index: {}]   ;;  %s317_s1 = inlined_call_operand.hbm [shape: f32[8,128], index: 1, kind: input, shape index: {}]   ;;  %s318_s2 = inlined_call_operand.hbm [shape: f32[8,128], index: 2, kind: input, shape index: {}]   ;;  %s319_s3 = inlined_call_operand.hbm [shape: f32[8,128], index: 3, kind: output, shape index: {0}]   ;;  %s320_s4 = inlined_call_operand.hbm [shape: f32[8,128], index: 4, kind: output, shape index: {1}]  }
   0x1   :  { %11 = vsyncpa [#allocation6], 0 }
   0x2   :  { %12 = vsyncpa [#allocation4], 0 }
   0x3   :  { %13 = vsyncpa [#allocation10], 0  ;;  %s226_s15 = smov [#allocation5]   ;;  %s227_s17 = smov [#allocation2]  }
   0x4   :  { %s30_s16 = sshll.u32 %s226_s15, 4  ;;  %s20_s18 = sshll.u32 %s227_s17, 4  ;;  %s31_s16 = int_to_ptr.vmem [resolvable:$true] %s30_s16  ;;  %s21_s18 = int_to_ptr.vmem [resolvable:$true] %s20_s18 }
   0x5   :  { %s108_s21 = scalar_lea.hbm %s317_s1, 128 }
   0x6   :  { %p109_p0 = scmp.ne.s32.totalorder %s317_s1, %s108_s21  ;;  %p112_p1 = scmp.lt.u32.totalorder %s108_s21, %s317_s1 }
   0x8   :  { %p114_p2 = pnand %p112_p1, %p109_p0 }
   0xa   :  { %117 = shalt.err (!%p114_p2)
}
   0xb   :  { %s118_s26 = scalar_lea.vmem %s31_s16, 128  ;;  %p123_p4 = scmp.lt.s32.totalorder %s31_s16, %s31_s16 }
   0xc   :  { %p119_p3 = scmp.ne.s32.totalorder %s31_s16, %s118_s26  ;;  %p124_p5 = scmp.lt.s32.totalorder %s118_s26, %s118_s26 }
   0xe   :  { %p125_p6 = por %p124_p5, %p123_p4 }
  0x10   :  { %p126_p7 = pnand %p125_p6, %p119_p3 }
  0x12   :  { %129 = shalt.err (!%p126_p7)
}
  0x13   :  { %33 = dma.hbm_to_vmem [thread:$0]  %s317_s1, 128, %s31_s16, [#allocation6]  }
  0x14   :  { %s130_s5 = scalar_lea.hbm %s316_s0, 128 }
  0x15   :  { %p131_p8 = scmp.ne.s32.totalorder %s316_s0, %s130_s5  ;;  %p134_p9 = scmp.lt.u32.totalorder %s130_s5, %s316_s0 }
  0x17   :  { %p136_p10 = pnand %p134_p9, %p131_p8 }
  0x19   :  { %139 = shalt.err (!%p136_p10)
}
  0x1a   :  { %s140_s10 = scalar_lea.vmem %s21_s18, 128  ;;  %p145_p12 = scmp.lt.s32.totalorder %s21_s18, %s21_s18 }
  0x1b   :  { %p141_p11 = scmp.ne.s32.totalorder %s21_s18, %s140_s10  ;;  %p146_p13 = scmp.lt.s32.totalorder %s140_s10, %s140_s10 }
  0x1d   :  { %p147_p0 = por %p146_p13, %p145_p12 }
  0x1f   :  { %p148_p1 = pnand %p147_p0, %p141_p11 }
  0x21   :  { %151 = shalt.err (!%p148_p1)
}
  0x22   :  { %23 = dma.hbm_to_vmem [thread:$0]  %s316_s0, 128, %s21_s18, [#allocation3]  }
  0x23   :  { %s228_s12 = smov [#allocation7]   ;;  %s152_s16 = scalar_lea.hbm %s318_s2, 128 }
  0x24   :  { %s40_s13 = sshll.u32 %s228_s12, 4  ;;  %p153_p2 = scmp.ne.s32.totalorder %s318_s2, %s152_s16  ;;  %s41_s13 = int_to_ptr.vmem [resolvable:$true] %s40_s13 }
  0x25   :  { %p156_p3 = scmp.lt.u32.totalorder %s152_s16, %s318_s2 }
  0x27   :  { %p158_p4 = pnand %p156_p3, %p153_p2 }
  0x29   :  { %161 = shalt.err (!%p158_p4)
}
  0x2a   :  { %s162_s22 = scalar_lea.vmem %s41_s13, 128  ;;  %p167_p6 = scmp.lt.s32.totalorder %s41_s13, %s41_s13 }
  0x2b   :  { %p163_p5 = scmp.ne.s32.totalorder %s41_s13, %s162_s22  ;;  %p168_p7 = scmp.lt.s32.totalorder %s162_s22, %s162_s22 }
  0x2d   :  { %p169_p8 = por %p168_p7, %p167_p6 }
  0x2f   :  { %p170_p9 = pnand %p169_p8, %p163_p5 }
  0x31   :  { %173 = shalt.err (!%p170_p9)
}
  0x32   :  { %43 = dma.hbm_to_vmem [thread:$0]  %s318_s2, 128, %s41_s13, [#allocation6]  }
  0x33   :  { %218 = dma.done.wait [#allocation3], 128  }
  0x34   :  { %219 = vsyncadd [#allocation3], 4294967168 }
  0x35   :  { %220 = dma.done.wait [#allocation6], 256  }
  0x36   :  { %221 = vsyncadd [#allocation6], 4294967040  ;;  %v53_v0 = vld [vmem:[#allocation2] sm:$0xff]  ;;  %v54_v1 = vld [vmem:[#allocation5] sm:$0xff]  ;;  %s229_s23 = smov [#allocation9]  }
  0x37   :  { %v55_v2 = vld [vmem:[#allocation7] sm:$0xff]  ;;  %s85_s24 = sshll.u32 %s229_s23, 4  ;;  %v58_v4 = vmul.f32 %v54_v1, %v54_v1  ;;  %104 = vlog2.f32 %v54_v1  ;;  %s86_s24 = int_to_ptr.vmem [resolvable:$true] %s85_s24 }
  0x38   :  { %v56_v3 = vsub.f32 %v55_v2, %v53_v0  ;;  %s174_s25 = scalar_lea.vmem %s86_s24, 128  ;;  %p179_p11 = scmp.lt.s32.totalorder %s86_s24, %s86_s24 }
  0x39   :  { %106 = vrcp.f32 %v58_v4  ;;  %p175_p10 = scmp.ne.s32.totalorder %s86_s24, %s174_s25  ;;  %p180_p12 = scmp.lt.s32.totalorder %s174_s25, %s174_s25 }
  0x3a   :  { %v57_v5 = vmul.f32 %v56_v3, %v56_v3 }
  0x3b   :  { %p181_p13 = por %p180_p12, %p179_p11 }
  0x3c   :  { %68 = vst [vmem:[#allocation9] sm:$0xff] %v57_v5 }
  0x3d   :  { %p182_p0 = pnand %p181_p13, %p175_p10 }
  0x3f   :  { %185 = shalt.err (!%p182_p0)
}
  0x40   :  { %s186_s27 = scalar_lea.hbm %s320_s4, 128 }
  0x41   :  { %p187_p1 = scmp.ne.s32.totalorder %s320_s4, %s186_s27  ;;  %p190_p2 = scmp.lt.u32.totalorder %s186_s27, %s320_s4 }
  0x43   :  { %p192_p3 = pnand %p190_p2, %p187_p1 }
  0x45   :  { %195 = shalt.err (!%p192_p3)
}
  0x46   :  { %88 = dma.vmem_to_hbm [thread:$0]  %s86_s24, 128, %s320_s4, [#allocation10]   ;;  %v105_v6 = vpop.eup %104 }
  0x47   :  { %v107_v7 = vpop.eup %106  ;;  %v63_v9 = vmul.f32 0.6931472, %v105_v6  ;;  %s230_s8 = smov [#allocation8]  }
  0x48   :  { %v60_v8 = vmul.f32 %v107_v7, %v57_v5  ;;  %s75_s9 = sshll.u32 %s230_s8, 4  ;;  %s76_s9 = int_to_ptr.vmem [resolvable:$true] %s75_s9 }
  0x49   :  { %s196_s10 = scalar_lea.vmem %s76_s9, 128  ;;  %p201_p5 = scmp.lt.s32.totalorder %s76_s9, %s76_s9 }
  0x4a   :  { %v61_v10 = vmul.f32 -0.5, %v60_v8  ;;  %p197_p4 = scmp.ne.s32.totalorder %s76_s9, %s196_s10  ;;  %p202_p6 = scmp.lt.s32.totalorder %s196_s10, %s196_s10 }
  0x4c   :  { %v64_v11 = vsub.f32 %v61_v10, %v63_v9  ;;  %p203_p7 = por %p202_p6, %p201_p5 }
  0x4e   :  { %66 = vst [vmem:[#allocation8] sm:$0xff] %v64_v11  ;;  %p204_p8 = pnand %p203_p7, %p197_p4 }
  0x50   :  { %207 = shalt.err (!%p204_p8)
}
  0x51   :  { %s208_s4 = scalar_lea.hbm %s319_s3, 128 }
  0x52   :  { %p209_p9 = scmp.ne.s32.totalorder %s319_s3, %s208_s4  ;;  %p212_p10 = scmp.lt.u32.totalorder %s208_s4, %s319_s3 }
  0x54   :  { %p214_p11 = pnand %p212_p10, %p209_p9 }
  0x56   :  { %217 = shalt.err (!%p214_p11)
}
  0x57   :  { %78 = dma.vmem_to_hbm [thread:$0]  %s76_s9, 128, %s319_s3, [#allocation4]  }
  0x58   :  { %222 = dma.done.wait [#allocation4], 128  }
  0x59   :  { %223 = vsyncadd [#allocation4], 4294967168 }
  0x5a   :  { %224 = dma.done.wait [#allocation10], 128  }
  0x5b   :  { %225 = vsyncadd [#allocation10], 4294967168 }
  0x5c   :  { %95 = vsyncpa [#allocation3], 1 }
  0x5d   :  { %96 = vsyncpa [#allocation6], 1 }
  0x5e   :  { %97 = vsyncpa [#allocation4], 1 }
  0x5f   :  { %98 = vsyncpa [#allocation10], 1 }

</bundles_post_ra>
